<compile_context>
chip_gen: v7x
topology: tpu7x:2x2x1
jax: 0.10.0
libtpu: 0.0.40
codegen_flags: <defaults>
</compile_context>

<pallas_src>
import functools

import numpy as np
import jax
import jax.numpy as jnp
from jax import lax
from jax.experimental import pallas as pl
from jax.experimental.pallas import tpu as pltpu


def _organism_kernel(w_ref, x_ref, o_ref, *, height, width):
    # w_ref: (9, C_out, C_in) f32   weight per tap, tap index t = ki*3 + kj
    # x_ref: (N, C_in, H*W)   f32   per-image flattened sensors
    # o_ref: (N, C_out, H*W)  f32   per-image flattened actuators
    n_batch, c_in, hw = x_ref.shape
    c_out = o_ref.shape[1]

    # Lane-index masks for the circular W-wrap fix-up (hoisted; shared by all
    # taps and batches — JAX does not CSE broadcasts).
    lane = lax.broadcasted_iota(jnp.int32, (c_in, hw), 1)
    col = lane % width
    first_col = col == 0
    last_col = col == width - 1

    # --- circular 3x3 conv as 9 accumulating MXU dots per batch image ---
    ys = []
    for n in range(n_batch):          # tiny static batch loop
        xb = x_ref[n]                 # (C_in, HW)

        roll_cache = {}
        def rolled(shift, xb=xb, roll_cache=roll_cache):
            # value[p] = xb[(p + s) mod HW]  with shift = (-s) % HW
            if shift not in roll_cache:
                roll_cache[shift] = (
                    xb if shift == 0 else pltpu.roll(xb, shift, axis=1))
            return roll_cache[shift]

        acc = jnp.zeros((c_out, hw), jnp.float32)
        for ki in range(3):
            for kj in range(3):
                dh, dw = ki - 1, kj - 1
                s = dh * width + dw
                # Rolling mod HW handles the circular h-wrap automatically;
                # only the w-wrap columns need a corrected roll + select.
                base = rolled((-s) % hw)
                if dw == 1:
                    tap = jnp.where(last_col, rolled((-(s - width)) % hw), base)
                elif dw == -1:
                    tap = jnp.where(first_col, rolled((-(s + width)) % hw), base)
                else:
                    tap = base
                acc = acc + jnp.dot(w_ref[ki * 3 + kj], tap,
                                    preferred_element_type=jnp.float32)
        ys.append(jnp.maximum(acc, 0.0))          # ReLU (VPU)

    # --- ch_norm over (batch, H, W) per output channel: two-pass variance ---
    inv_m = 1.0 / (n_batch * hw)
    total = ys[0]
    for y in ys[1:]:
        total = total + y
    mean = jnp.sum(total, axis=1, keepdims=True) * inv_m        # (C_out,1) XLU
    centered = [y - mean for y in ys]
    sq = centered[0] * centered[0]
    for c in centered[1:]:
        sq = sq + c * c
    var = jnp.sum(sq, axis=1, keepdims=True) * inv_m
    inv_std = lax.rsqrt(var + 1e-5)                             # EUP rsqrt

    # --- exact sigmoid, lane-dense per-batch stores (256-lane unmasked vst) ---
    for n in range(n_batch):
        z = centered[n] * inv_std
        o_ref[n] = 1.0 / (1.0 + jnp.exp(-z))


def organism_forward(x_nchw, weight):
    """x_nchw: (N, C_in, H, W) f32.  weight: (C_out, C_in, 3, 3) f32."""
    N, C_in, H, W = x_nchw.shape
    C_out = weight.shape[0]
    HW = H * W
    M = N * HW

    # Glue is metadata-only: NCHW is already contiguous as (N, C_in, H*W).
    x3 = x_nchw.reshape(N, C_in, HW)
    # Tiny (288-elem) weight prep; in a real module this is done once at init.
    w9 = jnp.transpose(weight, (2, 3, 0, 1)).reshape(9, C_out, C_in)

    cost = pl.CostEstimate(
        flops=2 * M * (9 * C_in) * C_out,
        transcendentals=2 * M * C_out + C_out,   # exp + reciprocal per elem, rsqrt per ch
        bytes_accessed=(N * C_in * HW + 9 * C_out * C_in + N * C_out * HW) * 4,
    )

    out3 = pl.pallas_call(
        functools.partial(_organism_kernel, height=H, width=W),
        out_shape=jax.ShapeDtypeStruct((N, C_out, HW), jnp.float32),
        grid=(1,),
        in_specs=[
            pl.BlockSpec((9, C_out, C_in), lambda i: (0, 0, 0)),
            pl.BlockSpec((N, C_in, HW), lambda i: (0, 0, 0)),
        ],
        out_specs=pl.BlockSpec((N, C_out, HW), lambda i: (0, 0, 0)),
        compiler_params=pltpu.CompilerParams(dimension_semantics=("arbitrary",)),
        cost_estimate=cost,
    )(w9, x3)

    # Metadata-only reshape back to NCHW (no transpose HLO).
    return out3.reshape(N, C_out, H, W)


def organism_reference(x_nchw, weight):
    """Pure-JAX f32 reference (independent path: lax conv with wrap padding)."""
    x_pad = jnp.pad(x_nchw, ((0, 0), (0, 0), (1, 1), (1, 1)), mode="wrap")
    y = jax.lax.conv_general_dilated(
        x_pad, weight, window_strides=(1, 1), padding="VALID",
        dimension_numbers=("NCHW", "OIHW", "NCHW"))
    y = jnp.maximum(y, 0.0)
    mean = jnp.mean(y, axis=(0, 2, 3), keepdims=True)
    var = jnp.mean((y - mean) ** 2, axis=(0, 2, 3), keepdims=True)
    y = (y - mean) / jnp.sqrt(var + 1e-5)
    return jax.nn.sigmoid(y)


if __name__ == "__main__":
    # Small shapes implied by the module: n_sensors=4, n_actuators=8, 16x16 world.
    N, C_in, C_out, H, W = 2, 4, 8, 16, 16

    key = jax.random.PRNGKey(0)
    kx, kw = jax.random.split(key)
    x = jax.random.normal(kx, (N, C_in, H, W), dtype=jnp.float32)
    # Deterministic synthetic conv weight (Conv2d(C_in, C_out, 3, bias=False)).
    fan_in = C_in * 3 * 3
    weight = jax.random.uniform(
        kw, (C_out, C_in, 3, 3), dtype=jnp.float32,
        minval=-1.0 / np.sqrt(fan_in), maxval=1.0 / np.sqrt(fan_in))

    out = jax.block_until_ready(jax.jit(organism_forward)(x, weight))
    ref = jax.block_until_ready(organism_reference(x, weight))

    assert out.shape == (N, C_out, H, W)
    # All-f32 path + exact sigmoid -> much tighter tolerance than the old bf16
    # version (residual slack only for MXU multi-pass f32 accumulation order).
    np.testing.assert_allclose(np.asarray(out), np.asarray(ref),
                               rtol=1e-3, atol=1e-3)
    print("KERNEL_OK")
</pallas_src>

<mosaic_0001>
module attributes {stable_mosaic.version = 11 : i64} {
  func.func @_organism_kernel(%arg0: i32, %arg1: memref<9x8x4xf32, #tpu.memory_space<vmem>>, %arg2: memref<2x4x256xf32, #tpu.memory_space<vmem>>, %arg3: memref<2x8x256xf32, #tpu.memory_space<vmem>>) attributes {dimension_semantics = [#tpu.dimension_semantics<arbitrary>], iteration_bounds = array<i64: 1>, scalar_prefetch = 0 : i64, scratch_operands = 0 : i64, tpu.core_type = #tpu.core_type<tc>, window_params = [{pipeline_mode = #tpu.pipeline_mode<synchronous>, transform_indices = @transform_0, window_bounds = array<i64: 9, 8, 4>}, {pipeline_mode = #tpu.pipeline_mode<synchronous>, transform_indices = @transform_1, window_bounds = array<i64: 2, 4, 256>}, {pipeline_mode = #tpu.pipeline_mode<synchronous>, transform_indices = @transform_2, window_bounds = array<i64: 2, 8, 256>}]} {
    %0 = tpu.iota {dimensions = array<i32: 1>} : vector<4x256xi32>
    %c16_i32 = arith.constant 16 : i32
    %c0_i32 = arith.constant 0 : i32
    %1 = arith.cmpi eq, %c16_i32, %c0_i32 : i32
    %c1_i32 = arith.constant 1 : i32
    %2 = arith.select %1, %c1_i32, %c16_i32 : i32
    %3 = vector.broadcast %2 : i32 to vector<4x256xi32>
    %4 = arith.remsi %0, %3 : vector<4x256xi32>
    %c0_i32_0 = arith.constant 0 : i32
    %5 = vector.broadcast %c0_i32_0 : i32 to vector<4x256xi32>
    %6 = arith.cmpi ne, %4, %5 : vector<4x256xi32>
    %c0_i32_1 = arith.constant 0 : i32
    %7 = vector.broadcast %c0_i32_1 : i32 to vector<4x256xi32>
    %8 = arith.cmpi slt, %4, %7 : vector<4x256xi32>
    %c0_i32_2 = arith.constant 0 : i32
    %9 = arith.cmpi slt, %2, %c0_i32_2 : i32
    %10 = vector.broadcast %9 : i1 to vector<4x256xi1>
    %11 = vector.broadcast %10 : vector<4x256xi1> to vector<4x256xi1>
    %12 = arith.xori %8, %11 : vector<4x256xi1>
    %13 = arith.andi %12, %6 : vector<4x256xi1>
    %14 = vector.broadcast %2 : i32 to vector<4x256xi32>
    %15 = arith.addi %4, %14 : vector<4x256xi32>
    %16 = arith.select %13, %15, %4 : vector<4x256xi1>, vector<4x256xi32>
    %c0_i32_3 = arith.constant 0 : i32
    %17 = vector.broadcast %c0_i32_3 : i32 to vector<4x256xi32>
    %18 = arith.cmpi eq, %16, %17 : vector<4x256xi32>
    %c15_i32 = arith.constant 15 : i32
    %19 = vector.broadcast %c15_i32 : i32 to vector<4x256xi32>
    %20 = arith.cmpi eq, %16, %19 : vector<4x256xi32>
    %c0 = arith.constant 0 : index
    %c0_4 = arith.constant 0 : index
    %c0_5 = arith.constant 0 : index
    %21 = vector.load %arg2[%c0, %c0_4, %c0_5] : memref<2x4x256xf32, #tpu.memory_space<vmem>>, vector<1x4x256xf32>
    %22 = vector.shape_cast %21 : vector<1x4x256xf32> to vector<4x256xf32>
    %cst = arith.constant 0.000000e+00 : f32
    %23 = vector.broadcast %cst : f32 to vector<8x256xf32>
    %c17_i32 = arith.constant 17 : i32
    %24 = tpu.dynamic_rotate %22 by %c17_i32 dim 1 : vector<4x256xf32>, i32 -> vector<4x256xf32>
    %c1_i32_6 = arith.constant 1 : i32
    %25 = tpu.dynamic_rotate %22 by %c1_i32_6 dim 1 : vector<4x256xf32>, i32 -> vector<4x256xf32>
    %26 = arith.select %18, %25, %24 : vector<4x256xi1>, vector<4x256xf32>
    %c0_7 = arith.constant 0 : index
    %c0_8 = arith.constant 0 : index
    %c0_9 = arith.constant 0 : index
    %27 = vector.load %arg1[%c0_7, %c0_8, %c0_9] : memref<9x8x4xf32, #tpu.memory_space<vmem>>, vector<1x8x4xf32>
    %28 = vector.shape_cast %27 : vector<1x8x4xf32> to vector<8x4xf32>
    %cst_10 = arith.constant dense<0.000000e+00> : vector<8x256xf32>
    %29 = tpu.matmul %28, %26, %cst_10 {dimension_numbers = #tpu.dot_dimension_numbers<[1], [0], [0], [1], [0, 0, 1, 1], [], []>} : vector<8x4xf32>, vector<4x256xf32>, vector<8x256xf32> -> vector<8x256xf32>
    %30 = arith.addf %23, %29 : vector<8x256xf32>
    %c16_i32_11 = arith.constant 16 : i32
    %31 = tpu.dynamic_rotate %22 by %c16_i32_11 dim 1 : vector<4x256xf32>, i32 -> vector<4x256xf32>
    %c1 = arith.constant 1 : index
    %c0_12 = arith.constant 0 : index
    %c0_13 = arith.constant 0 : index
    %32 = vector.load %arg1[%c1, %c0_12, %c0_13] : memref<9x8x4xf32, #tpu.memory_space<vmem>>, vector<1x8x4xf32>
    %33 = vector.shape_cast %32 : vector<1x8x4xf32> to vector<8x4xf32>
    %cst_14 = arith.constant dense<0.000000e+00> : vector<8x256xf32>
    %34 = tpu.matmul %33, %31, %cst_14 {dimension_numbers = #tpu.dot_dimension_numbers<[1], [0], [0], [1], [0, 0, 1, 1], [], []>} : vector<8x4xf32>, vector<4x256xf32>, vector<8x256xf32> -> vector<8x256xf32>
    %35 = arith.addf %30, %34 : vector<8x256xf32>
    %c15_i32_15 = arith.constant 15 : i32
    %36 = tpu.dynamic_rotate %22 by %c15_i32_15 dim 1 : vector<4x256xf32>, i32 -> vector<4x256xf32>
    %c31_i32 = arith.constant 31 : i32
    %37 = tpu.dynamic_rotate %22 by %c31_i32 dim 1 : vector<4x256xf32>, i32 -> vector<4x256xf32>
    %38 = arith.select %20, %37, %36 : vector<4x256xi1>, vector<4x256xf32>
    %c2 = arith.constant 2 : index
    %c0_16 = arith.constant 0 : index
    %c0_17 = arith.constant 0 : index
    %39 = vector.load %arg1[%c2, %c0_16, %c0_17] : memref<9x8x4xf32, #tpu.memory_space<vmem>>, vector<1x8x4xf32>
    %40 = vector.shape_cast %39 : vector<1x8x4xf32> to vector<8x4xf32>
    %cst_18 = arith.constant dense<0.000000e+00> : vector<8x256xf32>
    %41 = tpu.matmul %40, %38, %cst_18 {dimension_numbers = #tpu.dot_dimension_numbers<[1], [0], [0], [1], [0, 0, 1, 1], [], []>} : vector<8x4xf32>, vector<4x256xf32>, vector<8x256xf32> -> vector<8x256xf32>
    %42 = arith.addf %35, %41 : vector<8x256xf32>
    %c241_i32 = arith.constant 241 : i32
    %43 = tpu.dynamic_rotate %22 by %c241_i32 dim 1 : vector<4x256xf32>, i32 -> vector<4x256xf32>
    %44 = arith.select %18, %43, %25 : vector<4x256xi1>, vector<4x256xf32>
    %c3 = arith.constant 3 : index
    %c0_19 = arith.constant 0 : index
    %c0_20 = arith.constant 0 : index
    %45 = vector.load %arg1[%c3, %c0_19, %c0_20] : memref<9x8x4xf32, #tpu.memory_space<vmem>>, vector<1x8x4xf32>
    %46 = vector.shape_cast %45 : vector<1x8x4xf32> to vector<8x4xf32>
    %cst_21 = arith.constant dense<0.000000e+00> : vector<8x256xf32>
    %47 = tpu.matmul %46, %44, %cst_21 {dimension_numbers = #tpu.dot_dimension_numbers<[1], [0], [0], [1], [0, 0, 1, 1], [], []>} : vector<8x4xf32>, vector<4x256xf32>, vector<8x256xf32> -> vector<8x256xf32>
    %48 = arith.addf %42, %47 : vector<8x256xf32>
    %c4 = arith.constant 4 : index
    %c0_22 = arith.constant 0 : index
    %c0_23 = arith.constant 0 : index
    %49 = vector.load %arg1[%c4, %c0_22, %c0_23] : memref<9x8x4xf32, #tpu.memory_space<vmem>>, vector<1x8x4xf32>
    %50 = vector.shape_cast %49 : vector<1x8x4xf32> to vector<8x4xf32>
    %cst_24 = arith.constant dense<0.000000e+00> : vector<8x256xf32>
    %51 = tpu.matmul %50, %22, %cst_24 {dimension_numbers = #tpu.dot_dimension_numbers<[1], [0], [0], [1], [0, 0, 1, 1], [], []>} : vector<8x4xf32>, vector<4x256xf32>, vector<8x256xf32> -> vector<8x256xf32>
    %52 = arith.addf %48, %51 : vector<8x256xf32>
    %c255_i32 = arith.constant 255 : i32
    %53 = tpu.dynamic_rotate %22 by %c255_i32 dim 1 : vector<4x256xf32>, i32 -> vector<4x256xf32>
    %54 = arith.select %20, %36, %53 : vector<4x256xi1>, vector<4x256xf32>
    %c5 = arith.constant 5 : index
    %c0_25 = arith.constant 0 : index
    %c0_26 = arith.constant 0 : index
    %55 = vector.load %arg1[%c5, %c0_25, %c0_26] : memref<9x8x4xf32, #tpu.memory_space<vmem>>, vector<1x8x4xf32>
    %56 = vector.shape_cast %55 : vector<1x8x4xf32> to vector<8x4xf32>
    %cst_27 = arith.constant dense<0.000000e+00> : vector<8x256xf32>
    %57 = tpu.matmul %56, %54, %cst_27 {dimension_numbers = #tpu.dot_dimension_numbers<[1], [0], [0], [1], [0, 0, 1, 1], [], []>} : vector<8x4xf32>, vector<4x256xf32>, vector<8x256xf32> -> vector<8x256xf32>
    %58 = arith.addf %52, %57 : vector<8x256xf32>
    %c225_i32 = arith.constant 225 : i32
    %59 = tpu.dynamic_rotate %22 by %c225_i32 dim 1 : vector<4x256xf32>, i32 -> vector<4x256xf32>
    %60 = arith.select %18, %59, %43 : vector<4x256xi1>, vector<4x256xf32>
    %c6 = arith.constant 6 : index
    %c0_28 = arith.constant 0 : index
    %c0_29 = arith.constant 0 : index
    %61 = vector.load %arg1[%c6, %c0_28, %c0_29] : memref<9x8x4xf32, #tpu.memory_space<vmem>>, vector<1x8x4xf32>
    %62 = vector.shape_cast %61 : vector<1x8x4xf32> to vector<8x4xf32>
    %cst_30 = arith.constant dense<0.000000e+00> : vector<8x256xf32>
    %63 = tpu.matmul %62, %60, %cst_30 {dimension_numbers = #tpu.dot_dimension_numbers<[1], [0], [0], [1], [0, 0, 1, 1], [], []>} : vector<8x4xf32>, vector<4x256xf32>, vector<8x256xf32> -> vector<8x256xf32>
    %64 = arith.addf %58, %63 : vector<8x256xf32>
    %c240_i32 = arith.constant 240 : i32
    %65 = tpu.dynamic_rotate %22 by %c240_i32 dim 1 : vector<4x256xf32>, i32 -> vector<4x256xf32>
    %c7 = arith.constant 7 : index
    %c0_31 = arith.constant 0 : index
    %c0_32 = arith.constant 0 : index
    %66 = vector.load %arg1[%c7, %c0_31, %c0_32] : memref<9x8x4xf32, #tpu.memory_space<vmem>>, vector<1x8x4xf32>
    %67 = vector.shape_cast %66 : vector<1x8x4xf32> to vector<8x4xf32>
    %cst_33 = arith.constant dense<0.000000e+00> : vector<8x256xf32>
    %68 = tpu.matmul %67, %65, %cst_33 {dimension_numbers = #tpu.dot_dimension_numbers<[1], [0], [0], [1], [0, 0, 1, 1], [], []>} : vector<8x4xf32>, vector<4x256xf32>, vector<8x256xf32> -> vector<8x256xf32>
    %69 = arith.addf %64, %68 : vector<8x256xf32>
    %c239_i32 = arith.constant 239 : i32
    %70 = tpu.dynamic_rotate %22 by %c239_i32 dim 1 : vector<4x256xf32>, i32 -> vector<4x256xf32>
    %71 = arith.select %20, %53, %70 : vector<4x256xi1>, vector<4x256xf32>
    %c8 = arith.constant 8 : index
    %c0_34 = arith.constant 0 : index
    %c0_35 = arith.constant 0 : index
    %72 = vector.load %arg1[%c8, %c0_34, %c0_35] : memref<9x8x4xf32, #tpu.memory_space<vmem>>, vector<1x8x4xf32>
    %73 = vector.shape_cast %72 : vector<1x8x4xf32> to vector<8x4xf32>
    %cst_36 = arith.constant dense<0.000000e+00> : vector<8x256xf32>
    %74 = tpu.matmul %73, %71, %cst_36 {dimension_numbers = #tpu.dot_dimension_numbers<[1], [0], [0], [1], [0, 0, 1, 1], [], []>} : vector<8x4xf32>, vector<4x256xf32>, vector<8x256xf32> -> vector<8x256xf32>
    %75 = arith.addf %69, %74 : vector<8x256xf32>
    %cst_37 = arith.constant 0.000000e+00 : f32
    %76 = vector.broadcast %cst_37 : f32 to vector<8x256xf32>
    %77 = arith.maximumf %75, %76 : vector<8x256xf32>
    %c1_38 = arith.constant 1 : index
    %c0_39 = arith.constant 0 : index
    %c0_40 = arith.constant 0 : index
    %78 = vector.load %arg2[%c1_38, %c0_39, %c0_40] : memref<2x4x256xf32, #tpu.memory_space<vmem>>, vector<1x4x256xf32>
    %79 = vector.shape_cast %78 : vector<1x4x256xf32> to vector<4x256xf32>
    %cst_41 = arith.constant 0.000000e+00 : f32
    %80 = vector.broadcast %cst_41 : f32 to vector<8x256xf32>
    %c17_i32_42 = arith.constant 17 : i32
    %81 = tpu.dynamic_rotate %79 by %c17_i32_42 dim 1 : vector<4x256xf32>, i32 -> vector<4x256xf32>
    %c1_i32_43 = arith.constant 1 : i32
    %82 = tpu.dynamic_rotate %79 by %c1_i32_43 dim 1 : vector<4x256xf32>, i32 -> vector<4x256xf32>
    %83 = arith.select %18, %82, %81 : vector<4x256xi1>, vector<4x256xf32>
    %c0_44 = arith.constant 0 : index
    %c0_45 = arith.constant 0 : index
    %c0_46 = arith.constant 0 : index
    %84 = vector.load %arg1[%c0_44, %c0_45, %c0_46] : memref<9x8x4xf32, #tpu.memory_space<vmem>>, vector<1x8x4xf32>
    %85 = vector.shape_cast %84 : vector<1x8x4xf32> to vector<8x4xf32>
    %cst_47 = arith.constant dense<0.000000e+00> : vector<8x256xf32>
    %86 = tpu.matmul %85, %83, %cst_47 {dimension_numbers = #tpu.dot_dimension_numbers<[1], [0], [0], [1], [0, 0, 1, 1], [], []>} : vector<8x4xf32>, vector<4x256xf32>, vector<8x256xf32> -> vector<8x256xf32>
    %87 = arith.addf %80, %86 : vector<8x256xf32>
    %c16_i32_48 = arith.constant 16 : i32
    %88 = tpu.dynamic_rotate %79 by %c16_i32_48 dim 1 : vector<4x256xf32>, i32 -> vector<4x256xf32>
    %c1_49 = arith.constant 1 : index
    %c0_50 = arith.constant 0 : index
    %c0_51 = arith.constant 0 : index
    %89 = vector.load %arg1[%c1_49, %c0_50, %c0_51] : memref<9x8x4xf32, #tpu.memory_space<vmem>>, vector<1x8x4xf32>
    %90 = vector.shape_cast %89 : vector<1x8x4xf32> to vector<8x4xf32>
    %cst_52 = arith.constant dense<0.000000e+00> : vector<8x256xf32>
    %91 = tpu.matmul %90, %88, %cst_52 {dimension_numbers = #tpu.dot_dimension_numbers<[1], [0], [0], [1], [0, 0, 1, 1], [], []>} : vector<8x4xf32>, vector<4x256xf32>, vector<8x256xf32> -> vector<8x256xf32>
    %92 = arith.addf %87, %91 : vector<8x256xf32>
    %c15_i32_53 = arith.constant 15 : i32
    %93 = tpu.dynamic_rotate %79 by %c15_i32_53 dim 1 : vector<4x256xf32>, i32 -> vector<4x256xf32>
    %c31_i32_54 = arith.constant 31 : i32
    %94 = tpu.dynamic_rotate %79 by %c31_i32_54 dim 1 : vector<4x256xf32>, i32 -> vector<4x256xf32>
    %95 = arith.select %20, %94, %93 : vector<4x256xi1>, vector<4x256xf32>
    %c2_55 = arith.constant 2 : index
    %c0_56 = arith.constant 0 : index
    %c0_57 = arith.constant 0 : index
    %96 = vector.load %arg1[%c2_55, %c0_56, %c0_57] : memref<9x8x4xf32, #tpu.memory_space<vmem>>, vector<1x8x4xf32>
    %97 = vector.shape_cast %96 : vector<1x8x4xf32> to vector<8x4xf32>
    %cst_58 = arith.constant dense<0.000000e+00> : vector<8x256xf32>
    %98 = tpu.matmul %97, %95, %cst_58 {dimension_numbers = #tpu.dot_dimension_numbers<[1], [0], [0], [1], [0, 0, 1, 1], [], []>} : vector<8x4xf32>, vector<4x256xf32>, vector<8x256xf32> -> vector<8x256xf32>
    %99 = arith.addf %92, %98 : vector<8x256xf32>
    %c241_i32_59 = arith.constant 241 : i32
    %100 = tpu.dynamic_rotate %79 by %c241_i32_59 dim 1 : vector<4x256xf32>, i32 -> vector<4x256xf32>
    %101 = arith.select %18, %100, %82 : vector<4x256xi1>, vector<4x256xf32>
    %c3_60 = arith.constant 3 : index
    %c0_61 = arith.constant 0 : index
    %c0_62 = arith.constant 0 : index
    %102 = vector.load %arg1[%c3_60, %c0_61, %c0_62] : memref<9x8x4xf32, #tpu.memory_space<vmem>>, vector<1x8x4xf32>
    %103 = vector.shape_cast %102 : vector<1x8x4xf32> to vector<8x4xf32>
    %cst_63 = arith.constant dense<0.000000e+00> : vector<8x256xf32>
    %104 = tpu.matmul %103, %101, %cst_63 {dimension_numbers = #tpu.dot_dimension_numbers<[1], [0], [0], [1], [0, 0, 1, 1], [], []>} : vector<8x4xf32>, vector<4x256xf32>, vector<8x256xf32> -> vector<8x256xf32>
    %105 = arith.addf %99, %104 : vector<8x256xf32>
    %c4_64 = arith.constant 4 : index
    %c0_65 = arith.constant 0 : index
    %c0_66 = arith.constant 0 : index
    %106 = vector.load %arg1[%c4_64, %c0_65, %c0_66] : memref<9x8x4xf32, #tpu.memory_space<vmem>>, vector<1x8x4xf32>
    %107 = vector.shape_cast %106 : vector<1x8x4xf32> to vector<8x4xf32>
    %cst_67 = arith.constant dense<0.000000e+00> : vector<8x256xf32>
    %108 = tpu.matmul %107, %79, %cst_67 {dimension_numbers = #tpu.dot_dimension_numbers<[1], [0], [0], [1], [0, 0, 1, 1], [], []>} : vector<8x4xf32>, vector<4x256xf32>, vector<8x256xf32> -> vector<8x256xf32>
    %109 = arith.addf %105, %108 : vector<8x256xf32>
    %c255_i32_68 = arith.constant 255 : i32
    %110 = tpu.dynamic_rotate %79 by %c255_i32_68 dim 1 : vector<4x256xf32>, i32 -> vector<4x256xf32>
    %111 = arith.select %20, %93, %110 : vector<4x256xi1>, vector<4x256xf32>
    %c5_69 = arith.constant 5 : index
    %c0_70 = arith.constant 0 : index
    %c0_71 = arith.constant 0 : index
    %112 = vector.load %arg1[%c5_69, %c0_70, %c0_71] : memref<9x8x4xf32, #tpu.memory_space<vmem>>, vector<1x8x4xf32>
    %113 = vector.shape_cast %112 : vector<1x8x4xf32> to vector<8x4xf32>
    %cst_72 = arith.constant dense<0.000000e+00> : vector<8x256xf32>
    %114 = tpu.matmul %113, %111, %cst_72 {dimension_numbers = #tpu.dot_dimension_numbers<[1], [0], [0], [1], [0, 0, 1, 1], [], []>} : vector<8x4xf32>, vector<4x256xf32>, vector<8x256xf32> -> vector<8x256xf32>
    %115 = arith.addf %109, %114 : vector<8x256xf32>
    %c225_i32_73 = arith.constant 225 : i32
    %116 = tpu.dynamic_rotate %79 by %c225_i32_73 dim 1 : vector<4x256xf32>, i32 -> vector<4x256xf32>
    %117 = arith.select %18, %116, %100 : vector<4x256xi1>, vector<4x256xf32>
    %c6_74 = arith.constant 6 : index
    %c0_75 = arith.constant 0 : index
    %c0_76 = arith.constant 0 : index
    %118 = vector.load %arg1[%c6_74, %c0_75, %c0_76] : memref<9x8x4xf32, #tpu.memory_space<vmem>>, vector<1x8x4xf32>
    %119 = vector.shape_cast %118 : vector<1x8x4xf32> to vector<8x4xf32>
    %cst_77 = arith.constant dense<0.000000e+00> : vector<8x256xf32>
    %120 = tpu.matmul %119, %117, %cst_77 {dimension_numbers = #tpu.dot_dimension_numbers<[1], [0], [0], [1], [0, 0, 1, 1], [], []>} : vector<8x4xf32>, vector<4x256xf32>, vector<8x256xf32> -> vector<8x256xf32>
    %121 = arith.addf %115, %120 : vector<8x256xf32>
    %c240_i32_78 = arith.constant 240 : i32
    %122 = tpu.dynamic_rotate %79 by %c240_i32_78 dim 1 : vector<4x256xf32>, i32 -> vector<4x256xf32>
    %c7_79 = arith.constant 7 : index
    %c0_80 = arith.constant 0 : index
    %c0_81 = arith.constant 0 : index
    %123 = vector.load %arg1[%c7_79, %c0_80, %c0_81] : memref<9x8x4xf32, #tpu.memory_space<vmem>>, vector<1x8x4xf32>
    %124 = vector.shape_cast %123 : vector<1x8x4xf32> to vector<8x4xf32>
    %cst_82 = arith.constant dense<0.000000e+00> : vector<8x256xf32>
    %125 = tpu.matmul %124, %122, %cst_82 {dimension_numbers = #tpu.dot_dimension_numbers<[1], [0], [0], [1], [0, 0, 1, 1], [], []>} : vector<8x4xf32>, vector<4x256xf32>, vector<8x256xf32> -> vector<8x256xf32>
    %126 = arith.addf %121, %125 : vector<8x256xf32>
    %c239_i32_83 = arith.constant 239 : i32
    %127 = tpu.dynamic_rotate %79 by %c239_i32_83 dim 1 : vector<4x256xf32>, i32 -> vector<4x256xf32>
    %128 = arith.select %20, %110, %127 : vector<4x256xi1>, vector<4x256xf32>
    %c8_84 = arith.constant 8 : index
    %c0_85 = arith.constant 0 : index
    %c0_86 = arith.constant 0 : index
    %129 = vector.load %arg1[%c8_84, %c0_85, %c0_86] : memref<9x8x4xf32, #tpu.memory_space<vmem>>, vector<1x8x4xf32>
    %130 = vector.shape_cast %129 : vector<1x8x4xf32> to vector<8x4xf32>
    %cst_87 = arith.constant dense<0.000000e+00> : vector<8x256xf32>
    %131 = tpu.matmul %130, %128, %cst_87 {dimension_numbers = #tpu.dot_dimension_numbers<[1], [0], [0], [1], [0, 0, 1, 1], [], []>} : vector<8x4xf32>, vector<4x256xf32>, vector<8x256xf32> -> vector<8x256xf32>
    %132 = arith.addf %126, %131 : vector<8x256xf32>
    %cst_88 = arith.constant 0.000000e+00 : f32
    %133 = vector.broadcast %cst_88 : f32 to vector<8x256xf32>
    %134 = arith.maximumf %132, %133 : vector<8x256xf32>
    %135 = arith.addf %77, %134 : vector<8x256xf32>
    %cst_89 = arith.constant dense<0.000000e+00> : vector<8xf32>
    %136 = vector.multi_reduction <add>, %135, %cst_89 [1] : vector<8x256xf32> to vector<8xf32>
    %137 = vector.shape_cast %136 : vector<8xf32> to vector<8x1xf32>
    %cst_90 = arith.constant 0.001953125 : f32
    %138 = vector.broadcast %cst_90 : f32 to vector<8x1xf32>
    %139 = arith.mulf %137, %138 : vector<8x1xf32>
    %140 = vector.broadcast %139 : vector<8x1xf32> to vector<8x256xf32>
    %141 = arith.subf %77, %140 : vector<8x256xf32>
    %142 = vector.broadcast %139 : vector<8x1xf32> to vector<8x256xf32>
    %143 = arith.subf %134, %142 : vector<8x256xf32>
    %144 = arith.mulf %141, %141 : vector<8x256xf32>
    %145 = arith.mulf %143, %143 : vector<8x256xf32>
    %146 = arith.addf %144, %145 : vector<8x256xf32>
    %cst_91 = arith.constant dense<0.000000e+00> : vector<8xf32>
    %147 = vector.multi_reduction <add>, %146, %cst_91 [1] : vector<8x256xf32> to vector<8xf32>
    %148 = vector.shape_cast %147 : vector<8xf32> to vector<8x1xf32>
    %cst_92 = arith.constant 0.001953125 : f32
    %149 = vector.broadcast %cst_92 : f32 to vector<8x1xf32>
    %150 = arith.mulf %148, %149 : vector<8x1xf32>
    %cst_93 = arith.constant 9.99999974E-6 : f32
    %151 = vector.broadcast %cst_93 : f32 to vector<8x1xf32>
    %152 = arith.addf %150, %151 : vector<8x1xf32>
    %153 = math.rsqrt %152 : vector<8x1xf32>
    %154 = vector.broadcast %153 : vector<8x1xf32> to vector<8x256xf32>
    %155 = arith.mulf %141, %154 : vector<8x256xf32>
    %cst_94 = arith.constant 0.000000e+00 : f32
    %156 = vector.broadcast %cst_94 : f32 to vector<8x256xf32>
    %157 = arith.subf %156, %155 : vector<8x256xf32>
    %158 = math.exp %157 : vector<8x256xf32>
    %cst_95 = arith.constant 1.000000e+00 : f32
    %159 = vector.broadcast %cst_95 : f32 to vector<8x256xf32>
    %160 = arith.addf %159, %158 : vector<8x256xf32>
    %cst_96 = arith.constant 1.000000e+00 : f32
    %161 = vector.broadcast %cst_96 : f32 to vector<8x256xf32>
    %162 = arith.divf %161, %160 : vector<8x256xf32>
    %c0_97 = arith.constant 0 : index
    %c0_98 = arith.constant 0 : index
    %c0_99 = arith.constant 0 : index
    %163 = vector.load %arg3[%c0_97, %c0_98, %c0_99] : memref<2x8x256xf32, #tpu.memory_space<vmem>>, vector<1x8x256xf32>
    %164 = vector.shape_cast %163 : vector<1x8x256xf32> to vector<8x256xf32>
    %165 = vector.shape_cast %162 : vector<8x256xf32> to vector<1x8x256xf32>
    tpu.vector_store %arg3[%c0_97, %c0_98, %c0_99], %165 {strides = array<i32>} : memref<2x8x256xf32, #tpu.memory_space<vmem>>, vector<1x8x256xf32>,
    %166 = vector.broadcast %153 : vector<8x1xf32> to vector<8x256xf32>
    %167 = arith.mulf %143, %166 : vector<8x256xf32>
    %cst_100 = arith.constant 0.000000e+00 : f32
    %168 = vector.broadcast %cst_100 : f32 to vector<8x256xf32>
    %169 = arith.subf %168, %167 : vector<8x256xf32>
    %170 = math.exp %169 : vector<8x256xf32>
    %cst_101 = arith.constant 1.000000e+00 : f32
    %171 = vector.broadcast %cst_101 : f32 to vector<8x256xf32>
    %172 = arith.addf %171, %170 : vector<8x256xf32>
    %cst_102 = arith.constant 1.000000e+00 : f32
    %173 = vector.broadcast %cst_102 : f32 to vector<8x256xf32>
    %174 = arith.divf %173, %172 : vector<8x256xf32>
    %c1_103 = arith.constant 1 : index
    %c0_104 = arith.constant 0 : index
    %c0_105 = arith.constant 0 : index
    %175 = vector.load %arg3[%c1_103, %c0_104, %c0_105] : memref<2x8x256xf32, #tpu.memory_space<vmem>>, vector<1x8x256xf32>
    %176 = vector.shape_cast %175 : vector<1x8x256xf32> to vector<8x256xf32>
    %177 = vector.shape_cast %174 : vector<8x256xf32> to vector<1x8x256xf32>
    tpu.vector_store %arg3[%c1_103, %c0_104, %c0_105], %177 {strides = array<i32>} : memref<2x8x256xf32, #tpu.memory_space<vmem>>, vector<1x8x256xf32>,
    return
  }
  func.func @transform_0(%arg0: i32) -> (i32, i32, i32) {
    %c0_i32 = arith.constant 0 : i32
    %c0_i32_0 = arith.constant 0 : i32
    %c0_i32_1 = arith.constant 0 : i32
    %c0_i32_2 = arith.constant 0 : i32
    return %c0_i32, %c0_i32_0, %c0_i32_1 : i32, i32, i32
  }
  func.func @transform_1(%arg0: i32) -> (i32, i32, i32) {
    %c0_i32 = arith.constant 0 : i32
    %c0_i32_0 = arith.constant 0 : i32
    %c0_i32_1 = arith.constant 0 : i32
    %c0_i32_2 = arith.constant 0 : i32
    return %c0_i32, %c0_i32_0, %c0_i32_1 : i32, i32, i32
  }
  func.func @transform_2(%arg0: i32) -> (i32, i32, i32) {
    %c0_i32 = arith.constant 0 : i32
    %c0_i32_0 = arith.constant 0 : i32
    %c0_i32_1 = arith.constant 0 : i32
    %c0_i32_2 = arith.constant 0 : i32
    return %c0_i32, %c0_i32_0, %c0_i32_1 : i32, i32, i32
  }
}

</mosaic_0001>

<bundles_post_ra>
// kernel: organism_forward.1
= control target key start
LH: loop header
LB: loop body
LE: loop exit
PB: predicated region body
PF: predicated region fallthrough
CT: control target
= control target key end

     0   :  { %s1852_s13 = smov 16   ;;  %v1853_v4 = vmov 0.0   ;;  %s1855_s14 = smov 1   ;;  %v11_v5 = vlaneseq  ;;  %vm76_vm1 = vcmask 1043456   ;;  %vm72_vm2 = vcmask 31744   ;;  %s2237_s1 = inlined_call_operand.vmem [shape: f32[2,4,256], index: 1, kind: input, shape index: {}]   ;;  %s2238_s0 = inlined_call_operand.vmem [shape: f32[9,8,4], index: 0, kind: input, shape index: {}]   ;;  %s2239_s2 = inlined_call_operand.vmem [shape: f32[2,8,256], index: 2, kind: output, shape index: {}]  }
   0x1   :  { %v1881_v0 = vld [vmem:[%s2237_s1 + $0x8] sm:$0xff]  ;;  %v1886_v1 = vld [vmem:[%s2237_s1] sm:$0xff]  ;;  %147 = vmatprep.mubr.f32.mxu0 %v1853_v4  ;;  %976 = vmatprep.mubr.f32.mxu1 %v1853_v4  ;;  %s1854_s1 = smov 17   ;;  %s1856_s15 = smov 15   ;;  %v1731_v54 = vld [vmem:[%s2238_s0 + $0x10] sm:$0xff] }
   0x2   :  { %900 = vrot.lane.b32.xlu1 %v1881_v0, %s1852_s13  ;;  %63 = vrot.lane.b32.xlu0 %v1886_v1, %s1852_s13  ;;  %v1892_v2 = vcombine.high %v1881_v0, %v1881_v0  ;;  %v1896_v3 = vcombine.high %v1886_v1, %v1886_v1  ;;  %s1857_s16 = smov 31   ;;  %s1858_s17 = smov 113   ;;  %v1938_v6 = vand.u32 127, %v11_v5  ;;  %v1724_v16 = vld [vmem:[%s2238_s0 + $0x8] sm:$0xff]  ;;  %v62_v31 = vld [vmem:[%s2238_s0] sm:$0xff] }
   0x3   :  { %s1859_s18 = smov 127   ;;  %s1860_s19 = smov 97   ;;  %v1747_v22 = vld [vmem:[%s2238_s0 + $0x30] sm:$0xff] }
   0x4   :  { %s1861_s20 = smov 112   ;;  %s1862_s21 = smov 111   ;;  %vm67_vm0 = vcmp.lt.s32.totalorder %v1938_v6, 16  ;;  %v13_v9 = vadd.s32 128, %v1938_v6  ;;  %v18_v17 = vand.u32 15, %v1938_v6  ;;  %vm50_vm3 = vcmp.lt.s32.totalorder %v1938_v6, 17 }
   0x5   :  { %vm57_vm4 = vcmp.lt.s32.totalorder %v1938_v6, 1  ;;  %vm238_vm7 = vcmp.lt.s32.totalorder %v1938_v6, 15  ;;  %vm245_vm8 = vcmp.lt.s32.totalorder %v1938_v6, 31  ;;  %vm338_vm11 = vcmp.lt.s32.totalorder %v1938_v6, 113 }
   0x6   :  { %902 = vrot.lane.b32.xlu1 %v1892_v2, %s1852_s13  ;;  %65 = vrot.lane.b32.xlu0 %v1896_v3, %s1852_s13  ;;  %v25_v18 = vand.u32 15, %v13_v9  ;;  %vm1956_vm5 = vcmp.eq.s32.totalorder %v18_v17, 0  ;;  %vm2013_vm9 = vcmp.eq.s32.totalorder %v18_v17, 15  ;;  %vm513_vm12 = vcmp.lt.s32.totalorder %v1938_v6, 127 }
   0x7   :  { %vm606_vm13 = vcmp.lt.s32.totalorder %v1938_v6, 97  ;;  %vm699_vm14 = vcmp.lt.s32.totalorder %v1938_v6, 112  ;;  %vm790_vm15 = vcmp.lt.s32.totalorder %v1938_v6, 111  ;;  %v1755_v6 = vld [vmem:[%s2238_s0 + $0x40] sm:$0xff] }
   0x8   :  { %vm1960_vm6 = vcmp.eq.s32.totalorder %v25_v18, 0  ;;  %vm2017_vm10 = vcmp.eq.s32.totalorder %v25_v18, 15 }
   0xa   :  { %48 = vrot.lane.b32.xlu1 %v1896_v3, %s1854_s1  ;;  %46 = vrot.lane.b32.xlu0 %v1886_v1, %s1854_s1 }
   0xe   :  { %55 = vrot.lane.b32.xlu1 %v1896_v3, %s1855_s14  ;;  %53 = vrot.lane.b32.xlu0 %v1886_v1, %s1855_s14 }
  0x12   :  { %888 = vrot.lane.b32.xlu1 %v1892_v2, %s1854_s1  ;;  %886 = vrot.lane.b32.xlu0 %v1881_v0, %s1854_s1 }
  0x16   :  { %894 = vrot.lane.b32.xlu1 %v1892_v2, %s1855_s14  ;;  %892 = vrot.lane.b32.xlu0 %v1881_v0, %s1855_s14 }
  0x1a   :  { %236 = vrot.lane.b32.xlu1 %v1896_v3, %s1856_s15  ;;  %234 = vrot.lane.b32.xlu0 %v1886_v1, %s1856_s15 }
  0x1e   :  { %243 = vrot.lane.b32.xlu1 %v1896_v3, %s1857_s16  ;;  %241 = vrot.lane.b32.xlu0 %v1886_v1, %s1857_s16 }
  0x22   :  { %1062 = vrot.lane.b32.xlu1 %v1892_v2, %s1856_s15  ;;  %1060 = vrot.lane.b32.xlu0 %v1881_v0, %s1856_s15 }
  0x26   :  { %1068 = vrot.lane.b32.xlu1 %v1892_v2, %s1857_s16  ;;  %1066 = vrot.lane.b32.xlu0 %v1881_v0, %s1857_s16 }
  0x2a   :  { %336 = vrot.lane.b32.xlu1 %v1896_v3, %s1858_s17  ;;  %334 = vrot.lane.b32.xlu0 %v1886_v1, %s1858_s17 }
  0x2e   :  { %1155 = vrot.lane.b32.xlu1 %v1892_v2, %s1858_s17  ;;  %1153 = vrot.lane.b32.xlu0 %v1881_v0, %s1858_s17 }
  0x32   :  { %511 = vrot.lane.b32.xlu1 %v1896_v3, %s1859_s18  ;;  %509 = vrot.lane.b32.xlu0 %v1886_v1, %s1859_s18 }
  0x36   :  { %1319 = vrot.lane.b32.xlu1 %v1892_v2, %s1859_s18  ;;  %1317 = vrot.lane.b32.xlu0 %v1881_v0, %s1859_s18 }
  0x3a   :  { %604 = vrot.lane.b32.xlu1 %v1896_v3, %s1860_s19  ;;  %602 = vrot.lane.b32.xlu0 %v1886_v1, %s1860_s19 }
  0x3e   :  { %1406 = vrot.lane.b32.xlu1 %v1892_v2, %s1860_s19  ;;  %1404 = vrot.lane.b32.xlu0 %v1881_v0, %s1860_s19 }
  0x42   :  { %697 = vrot.lane.b32.xlu1 %v1896_v3, %s1861_s20  ;;  %695 = vrot.lane.b32.xlu0 %v1886_v1, %s1861_s20 }
  0x46   :  { %1493 = vrot.lane.b32.xlu1 %v1892_v2, %s1861_s20  ;;  %1491 = vrot.lane.b32.xlu0 %v1881_v0, %s1861_s20 }
  0x4a   :  { %788 = vrot.lane.b32.xlu1 %v1896_v3, %s1862_s21  ;;  %786 = vrot.lane.b32.xlu0 %v1886_v1, %s1862_s21 }
  0x4e   :  { %1578 = vrot.lane.b32.xlu1 %v1892_v2, %s1862_s21  ;;  %1576 = vrot.lane.b32.xlu0 %v1881_v0, %s1862_s21 }
  0x74   :  { %v901_v7 = vpop.permute.xlu1 %900  ;;  %v64_v8 = vpop.permute.xlu0 %63 }
  0x78   :  { %v903_v10 = vpop.permute.xlu1 %902  ;;  %v66_v11 = vpop.permute.xlu0 %65 }
  0x79   :  { %v68_v12 = vsel %vm67_vm0, %v64_v8, %v66_v11  ;;  %v904_v13 = vsel %vm67_vm0, %v901_v7, %v903_v10  ;;  %v69_v14 = vsel %vm67_vm0, %v66_v11, %v64_v8  ;;  %v905_v15 = vsel %vm67_vm0, %v903_v10, %v901_v7 }
  0x7a   :  { %1725 = vmatprep.subr.msk.mxu0 %vm76_vm1, %v68_v12  ;;  %1760 = vmatprep.subr.msk.mxu1 %vm76_vm1, %v904_v13  ;;  %v1735_v13 = vld [vmem:[%s2238_s0 + $0x18] sm:$0xff] }
  0x7b   :  { %1726 = vmatpush1.msk.msra.mxu0 %vm76_vm1, %v69_v14  ;;  %1761 = vmatpush1.msk.msra.mxu1 %vm76_vm1, %v905_v15 }
  0x7c   :  { %v49_v19 = vpop.permute.xlu1 %48  ;;  %v47_v20 = vpop.permute.xlu0 %46  ;;  %1727 = vmatmul.mubr.msk.f32.vlgmr.msra.gmra.mrb[0].mxu0 %vm72_vm2, %v1724_v16  ;;  %1762 = vmatmul.mubr.msk.f32.vlgmr.msra.gmra.mrb[0].mxu1 %vm72_vm2, %v1724_v16 }
  0x7d   :  { %227 = vmatprep.mubr.f32.mxu0 %v1853_v4  ;;  %1053 = vmatprep.mubr.f32.mxu1 %v1853_v4  ;;  %v51_v25 = vsel %vm50_vm3, %v47_v20, %v49_v19  ;;  %v52_v26 = vsel %vm50_vm3, %v49_v19, %v47_v20 }
  0x80   :  { %v56_v23 = vpop.permute.xlu1 %55  ;;  %v54_v24 = vpop.permute.xlu0 %53 }
  0x81   :  { %v1970_v27 = vsel %vm57_vm4, %v54_v24, %v56_v23  ;;  %v1974_v28 = vsel %vm57_vm4, %v56_v23, %v54_v24 }
  0x82   :  { %v60_v29 = vsel %vm1956_vm5, %v1974_v28, %v52_v26  ;;  %v61_v30 = vsel %vm1960_vm6, %v1970_v27, %v51_v25  ;;  %v1739_v25 = vld [vmem:[%s2238_s0 + $0x20] sm:$0xff] }
  0x83   :  { %1728 = vmatprep.subr.msk.mxu0 %vm76_vm1, %v61_v30 }
  0x84   :  { %v889_v32 = vpop.permute.xlu1 %888  ;;  %v887_v33 = vpop.permute.xlu0 %886  ;;  %1729 = vmatpush1.msk.msra.mxu0 %vm76_vm1, %v60_v29 }
  0x85   :  { %1730 = vmatmul.mubr.msk.f32.vlgmr.msra.gmra.mrb[0].mxu0 %vm72_vm2, %v62_v31  ;;  %v890_v36 = vsel %vm50_vm3, %v887_v33, %v889_v32  ;;  %v891_v37 = vsel %vm50_vm3, %v889_v32, %v887_v33 }
  0x86   :  { %325 = vmatprep.mubr.f32.mxu0 %v1853_v4 }
  0x88   :  { %v895_v34 = vpop.permute.xlu1 %894  ;;  %v893_v35 = vpop.permute.xlu0 %892 }
  0x89   :  { %v1995_v38 = vsel %vm57_vm4, %v893_v35, %v895_v34  ;;  %v1999_v39 = vsel %vm57_vm4, %v895_v34, %v893_v35 }
  0x8a   :  { %v898_v40 = vsel %vm1956_vm5, %v1999_v39, %v891_v37  ;;  %v899_v41 = vsel %vm1960_vm6, %v1995_v38, %v890_v36  ;;  %v1743_v36 = vld [vmem:[%s2238_s0 + $0x28] sm:$0xff] }
  0x8b   :  { %1763 = vmatprep.subr.msk.mxu1 %vm76_vm1, %v899_v41 }
  0x8c   :  { %v237_v42 = vpop.permute.xlu1 %236  ;;  %v235_v43 = vpop.permute.xlu0 %234  ;;  %1764 = vmatpush1.msk.msra.mxu1 %vm76_vm1, %v898_v40 }
  0x8d   :  { %1765 = vmatmul.mubr.msk.f32.vlgmr.msra.gmra.mrb[0].mxu1 %vm72_vm2, %v62_v31  ;;  %v239_v48 = vsel %vm238_vm7, %v235_v43, %v237_v42  ;;  %v2025_v49 = vsel %vm238_vm7, %v237_v42, %v235_v43 }
  0x8e   :  { %1144 = vmatprep.mubr.f32.mxu1 %v1853_v4 }
  0x90   :  { %v244_v46 = vpop.permute.xlu1 %243  ;;  %v242_v47 = vpop.permute.xlu0 %241 }
  0x91   :  { %v246_v50 = vsel %vm245_vm8, %v242_v47, %v244_v46  ;;  %v247_v51 = vsel %vm245_vm8, %v244_v46, %v242_v47 }
  0x92   :  { %v248_v52 = vsel %vm2013_vm9, %v247_v51, %v2025_v49  ;;  %v249_v53 = vsel %vm2017_vm10, %v246_v50, %v239_v48 }
  0x93   :  { %1732 = vmatprep.subr.msk.mxu0 %vm76_vm1, %v249_v53 }
  0x94   :  { %v1063_v55 = vpop.permute.xlu1 %1062  ;;  %v1061_v56 = vpop.permute.xlu0 %1060  ;;  %1733 = vmatpush1.msk.msra.mxu0 %vm76_vm1, %v248_v52 }
  0x95   :  { %1734 = vmatmul.mubr.msk.f32.vlgmr.msra.gmra.mrb[0].mxu0 %vm72_vm2, %v1731_v54  ;;  %v1064_v59 = vsel %vm238_vm7, %v1061_v56, %v1063_v55  ;;  %v1065_v60 = vsel %vm238_vm7, %v1063_v55, %v1061_v56 }
  0x96   :  { %418 = vmatprep.mubr.f32.mxu0 %v1853_v4 }
  0x98   :  { %v1069_v57 = vpop.permute.xlu1 %1068  ;;  %v1067_v58 = vpop.permute.xlu0 %1066 }
  0x99   :  { %v1070_v61 = vsel %vm245_vm8, %v1067_v58, %v1069_v57  ;;  %v1071_v62 = vsel %vm245_vm8, %v1069_v57, %v1067_v58  ;;  %v1751_v58 = vld [vmem:[%s2238_s0 + $0x38] sm:$0xff] }
  0x9a   :  { %v1072_v63 = vsel %vm2013_vm9, %v1071_v62, %v1065_v60  ;;  %v1073_v5 = vsel %vm2017_vm10, %v1070_v61, %v1064_v59 }
  0x9b   :  { %1766 = vmatprep.subr.msk.mxu1 %vm76_vm1, %v1073_v5 }
  0x9c   :  { %v337_v7 = vpop.permute.xlu1 %336  ;;  %v335_v8 = vpop.permute.xlu0 %334  ;;  %1767 = vmatpush1.msk.msra.mxu1 %vm76_vm1, %v1072_v63 }
  0x9d   :  { %v339_v9 = vsel %vm338_vm11, %v335_v8, %v337_v7  ;;  %v340_v10 = vsel %vm338_vm11, %v337_v7, %v335_v8  ;;  %1768 = vmatmul.mubr.msk.f32.vlgmr.msra.gmra.mrb[0].mxu1 %vm72_vm2, %v1731_v54 }
  0x9e   :  { %v341_v11 = vsel %vm1956_vm5, %v339_v9, %v1974_v28  ;;  %v342_v12 = vsel %vm1960_vm6, %v340_v10, %v1970_v27  ;;  %1231 = vmatprep.mubr.f32.mxu1 %v1853_v4 }
  0x9f   :  { %1736 = vmatprep.subr.msk.mxu0 %vm76_vm1, %v342_v12 }
  0xa0   :  { %v1156_v14 = vpop.permute.xlu1 %1155  ;;  %v1154_v15 = vpop.permute.xlu0 %1153  ;;  %1737 = vmatpush1.msk.msra.mxu0 %vm76_vm1, %v341_v11 }
  0xa1   :  { %v1157_v16 = vsel %vm338_vm11, %v1154_v15, %v1156_v14  ;;  %v1158_v17 = vsel %vm338_vm11, %v1156_v14, %v1154_v15  ;;  %1738 = vmatmul.mubr.msk.f32.vlgmr.msra.gmra.mrb[0].mxu0 %vm72_vm2, %v1735_v13  ;;  %1740 = vmatprep.subr.msk.mxu0 %vm76_vm1, %v1896_v3 }
  0xa2   :  { %v1159_v18 = vsel %vm1956_vm5, %v1157_v16, %v1999_v39  ;;  %v1160_v19 = vsel %vm1960_vm6, %v1158_v17, %v1995_v38  ;;  %1741 = vmatpush1.msk.msra.mxu0 %vm76_vm1, %v1886_v1  ;;  %500 = vmatprep.mubr.f32.mxu0 %v1853_v4 }
  0xa3   :  { %1769 = vmatprep.subr.msk.mxu1 %vm76_vm1, %v1160_v19 }
  0xa4   :  { %v512_v20 = vpop.permute.xlu1 %511  ;;  %v510_v23 = vpop.permute.xlu0 %509  ;;  %1770 = vmatpush1.msk.msra.mxu1 %vm76_vm1, %v1159_v18 }
  0xa5   :  { %v2096_v3 = vsel %vm513_vm12, %v512_v20, %v510_v23  ;;  %1771 = vmatmul.mubr.msk.f32.vlgmr.msra.gmra.mrb[0].mxu1 %vm72_vm2, %v1735_v13  ;;  %1772 = vmatprep.subr.msk.mxu1 %vm76_vm1, %v1892_v2  ;;  %v2103_v1 = vsel %vm513_vm12, %v510_v23, %v512_v20 }
  0xa6   :  { %v517_v24 = vsel %vm2017_vm10, %v239_v48, %v2096_v3  ;;  %1773 = vmatpush1.msk.msra.mxu1 %vm76_vm1, %v1881_v0  ;;  %1308 = vmatprep.mubr.f32.mxu1 %v1853_v4  ;;  %v516_v27 = vsel %vm2013_vm9, %v2025_v49, %v2103_v1 }
  0xa7   :  { %1744 = vmatprep.subr.msk.mxu0 %vm76_vm1, %v517_v24 }
  0xa8   :  { %v1320_v2 = vpop.permute.xlu1 %1319  ;;  %v1318_v26 = vpop.permute.xlu0 %1317 }
  0xa9   :  { %v2121_v28 = vsel %vm513_vm12, %v1320_v2, %v1318_v26  ;;  %1742 = vmatmul.mubr.msk.f32.vlgmr.msra.gmra.mrb[0].mxu0 %vm72_vm2, %v1739_v25  ;;  %v2126_v0 = vsel %vm513_vm12, %v1318_v26, %v1320_v2 }
  0xaa   :  { %1745 = vmatpush1.msk.msra.mxu0 %vm76_vm1, %v516_v27  ;;  %v1324_v29 = vsel %vm2017_vm10, %v1064_v59, %v2121_v28  ;;  %593 = vmatprep.mubr.f32.mxu0 %v1853_v4  ;;  %v1323_v32 = vsel %vm2013_vm9, %v1065_v60, %v2126_v0 }
  0xab   :  { %1775 = vmatprep.subr.msk.mxu1 %vm76_vm1, %v1324_v29 }
  0xac   :  { %v605_v30 = vpop.permute.xlu1 %604  ;;  %v603_v31 = vpop.permute.xlu0 %602 }
  0xad   :  { %v608_v33 = vsel %vm606_vm13, %v605_v30, %v603_v31  ;;  %1774 = vmatmul.mubr.msk.f32.vlgmr.msra.gmra.mrb[0].mxu1 %vm72_vm2, %v1739_v25  ;;  %v607_v34 = vsel %vm606_vm13, %v603_v31, %v605_v30 }
  0xae   :  { %1776 = vmatpush1.msk.msra.mxu1 %vm76_vm1, %v1323_v32  ;;  %v610_v35 = vsel %vm1960_vm6, %v608_v33, %v340_v10  ;;  %1395 = vmatprep.mubr.f32.mxu1 %v1853_v4  ;;  %v609_v39 = vsel %vm1956_vm5, %v607_v34, %v339_v9 }
  0xaf   :  { %1748 = vmatprep.subr.msk.mxu0 %vm76_vm1, %v610_v35 }
  0xb0   :  { %v1407_v37 = vpop.permute.xlu1 %1406  ;;  %v1405_v38 = vpop.permute.xlu0 %1404 }
  0xb1   :  { %v1409_v40 = vsel %vm606_vm13, %v1407_v37, %v1405_v38  ;;  %1746 = vmatmul.mubr.msk.f32.vlgmr.msra.gmra.mrb[0].mxu0 %vm72_vm2, %v1743_v36  ;;  %v1408_v41 = vsel %vm606_vm13, %v1405_v38, %v1407_v37 }
  0xb2   :  { %1749 = vmatpush1.msk.msra.mxu0 %vm76_vm1, %v609_v39  ;;  %v1411_v42 = vsel %vm1960_vm6, %v1409_v40, %v1158_v17  ;;  %686 = vmatprep.mubr.f32.mxu0 %v1853_v4  ;;  %v1410_v47 = vsel %vm1956_vm5, %v1408_v41, %v1157_v16 }
  0xb3   :  { %1778 = vmatprep.subr.msk.mxu1 %vm76_vm1, %v1411_v42 }
  0xb4   :  { %v698_v43 = vpop.permute.xlu1 %697  ;;  %v696_v46 = vpop.permute.xlu0 %695 }
  0xb5   :  { %v701_v48 = vsel %vm699_vm14, %v698_v43, %v696_v46  ;;  %1777 = vmatmul.mubr.msk.f32.vlgmr.msra.gmra.mrb[0].mxu1 %vm72_vm2, %v1743_v36  ;;  %v700_v49 = vsel %vm699_vm14, %v696_v46, %v698_v43 }
  0xb6   :  { %1779 = vmatpush1.msk.msra.mxu1 %vm76_vm1, %v1410_v47  ;;  %1482 = vmatprep.mubr.f32.mxu1 %v1853_v4 }
  0xb7   :  { %1752 = vmatprep.subr.msk.mxu0 %vm76_vm1, %v701_v48 }
  0xb8   :  { %v1494_v21 = vpop.permute.xlu1 %1493  ;;  %v1492_v50 = vpop.permute.xlu0 %1491 }
  0xb9   :  { %v1496_v51 = vsel %vm699_vm14, %v1494_v21, %v1492_v50  ;;  %1750 = vmatmul.mubr.msk.f32.vlgmr.msra.gmra.mrb[0].mxu0 %vm72_vm2, %v1747_v22  ;;  %v1495_v52 = vsel %vm699_vm14, %v1492_v50, %v1494_v21 }
  0xba   :  { %1753 = vmatpush1.msk.msra.mxu0 %vm76_vm1, %v700_v49  ;;  %777 = vmatprep.mubr.f32.mxu0 %v1853_v4 }
  0xbb   :  { %1781 = vmatprep.subr.msk.mxu1 %vm76_vm1, %v1496_v51 }
  0xbc   :  { %v789_v53 = vpop.permute.xlu1 %788  ;;  %v787_v54 = vpop.permute.xlu0 %786 }
  0xbd   :  { %v792_v55 = vsel %vm790_vm15, %v789_v53, %v787_v54  ;;  %1780 = vmatmul.mubr.msk.f32.vlgmr.msra.gmra.mrb[0].mxu1 %vm72_vm2, %v1747_v22  ;;  %v791_v56 = vsel %vm790_vm15, %v787_v54, %v789_v53 }
  0xbe   :  { %v794_v57 = vsel %vm2017_vm10, %v2096_v3, %v792_v55  ;;  %1782 = vmatpush1.msk.msra.mxu1 %vm76_vm1, %v1495_v52  ;;  %1567 = vmatprep.mubr.f32.mxu1 %v1853_v4  ;;  %v793_v61 = vsel %vm2013_vm9, %v2103_v1, %v791_v56 }
  0xbf   :  { %1756 = vmatprep.subr.msk.mxu0 %vm76_vm1, %v794_v57 }
  0xc0   :  { %v1579_v59 = vpop.permute.xlu1 %1578  ;;  %v1577_v60 = vpop.permute.xlu0 %1576 }
  0xc1   :  { %v1581_v62 = vsel %vm790_vm15, %v1579_v59, %v1577_v60  ;;  %1754 = vmatmul.mubr.msk.f32.vlgmr.msra.gmra.mrb[0].mxu0 %vm72_vm2, %v1751_v58  ;;  %v1580_v63 = vsel %vm790_vm15, %v1577_v60, %v1579_v59 }
  0xc2   :  { %1757 = vmatpush1.msk.msra.mxu0 %vm76_vm1, %v793_v61  ;;  %v1583_v5 = vsel %vm2017_vm10, %v2121_v28, %v1581_v62  ;;  %870 = vmatprep.mubr.f32.mxu0 %v1853_v4  ;;  %v1582_v7 = vsel %vm2013_vm9, %v2126_v0, %v1580_v63 }
  0xc3   :  { %1784 = vmatprep.subr.msk.mxu1 %vm76_vm1, %v1583_v5 }
  0xc5   :  { %1783 = vmatmul.mubr.msk.f32.vlgmr.msra.gmra.mrb[0].mxu1 %vm72_vm2, %v1751_v58 }
  0xc6   :  { %1785 = vmatpush1.msk.msra.mxu1 %vm76_vm1, %v1582_v7  ;;  %1654 = vmatprep.mubr.f32.mxu1 %v1853_v4 }
  0xc9   :  { %1758 = vmatmul.mubr.msk.f32.vlgmr.msra.gmra.mrb[0].mxu0 %vm72_vm2, %v1755_v6 }
  0xcd   :  { %1786 = vmatmul.mubr.msk.f32.vlgmr.msra.gmra.mrb[0].mxu1 %vm72_vm2, %v1755_v6 }
 0x19c   :  { %v872_v45 = vpop.f32.mrb[0].mxu0 }
 0x19d   :  { %v874_v8 = vpop.f32.mrb[1].mxu0  ;;  %v879_v10 = vmax.f32 %v872_v45, 0.0 }
 0x19e   :  { %v880_v12 = vmax.f32 %v874_v8, 0.0 }
 0x1a0   :  { %v1656_v9 = vpop.f32.mrb[0].mxu1 }
 0x1a1   :  { %v1663_v44 = vmax.f32 %v1656_v9, 0.0  ;;  %v1658_v11 = vpop.f32.mrb[1].mxu1 }
 0x1a2   :  { %v1664_v13 = vmax.f32 %v1658_v11, 0.0 }
 0x1a3   :  { %v1665_v14 = vadd.f32 %v1663_v44, %v879_v10 }
 0x1a4   :  { %v1666_v15 = vadd.f32 %v1664_v13, %v880_v12 }
 0x1a6   :  { %v1667_v16 = vadd.f32 %v1666_v15, %v1665_v14 }
 0x1a8   :  { %1668 = vadd.xlane.f32.xlu0 %v1667_v16 }
 0x235   :  { %v1669_v17 = vpop.xlane.xlu0 %1668 }
 0x236   :  { %v1670_v18 = vmul.f32 0.001953125, %v1669_v17 }
 0x238   :  { %v1671_v19 = vsub.f32 %v879_v10, %v1670_v18  ;;  %v1672_v4 = vsub.f32 %v880_v12, %v1670_v18  ;;  %v1673_v20 = vsub.f32 %v1663_v44, %v1670_v18  ;;  %v1674_v23 = vsub.f32 %v1664_v13, %v1670_v18 }
 0x23a   :  { %v1675_v3 = vmul.f32 %v1671_v19, %v1671_v19  ;;  %v1676_v1 = vmul.f32 %v1672_v4, %v1672_v4  ;;  %v1677_v24 = vmul.f32 %v1673_v20, %v1673_v20  ;;  %v1678_v25 = vmul.f32 %v1674_v23, %v1674_v23 }
 0x23c   :  { %v1679_v2 = vadd.f32 %v1677_v24, %v1675_v3  ;;  %v1680_v26 = vadd.f32 %v1678_v25, %v1676_v1 }
 0x23e   :  { %v1681_v27 = vadd.f32 %v1680_v26, %v1679_v2 }
 0x240   :  { %1682 = vadd.xlane.f32.xlu1 %v1681_v27 }
 0x2cd   :  { %v1683_v28 = vpop.xlane.xlu1 %1682 }
 0x2ce   :  { %v1684_v0 = vmul.f32 0.001953125, %v1683_v28 }
 0x2d0   :  { %v1685_v29 = vadd.f32 1e-05, %v1684_v0 }
 0x2d2   :  { %1834 = vrsqrt.f32 %v1685_v29 }
 0x2dc   :  { %v1835_v30 = vpop.eup %1834 }
 0x2dd   :  { %v1687_v31 = vmul.f32 %v1835_v30, %v1671_v19  ;;  %v1688_v32 = vmul.f32 %v1835_v30, %v1672_v4  ;;  %v1703_v33 = vmul.f32 %v1835_v30, %v1673_v20  ;;  %v1704_v34 = vmul.f32 %v1835_v30, %v1674_v23 }
 0x2df   :  { %v1689_v35 = vsub.f32 0.0, %v1687_v31  ;;  %v1690_v36 = vsub.f32 0.0, %v1688_v32  ;;  %v1705_v37 = vsub.f32 0.0, %v1703_v33  ;;  %v1706_v38 = vsub.f32 0.0, %v1704_v34 }
 0x2e1   :  { %v1691_v39 = vmul.f32 1.442695, %v1689_v35  ;;  %v1693_v40 = vmul.f32 1.442695, %v1690_v36  ;;  %v1707_v41 = vmul.f32 1.442695, %v1705_v37 }
 0x2e2   :  { %v1709_v42 = vmul.f32 1.442695, %v1706_v38 }
 0x2e3   :  { %1836 = vpow2.f32 %v1691_v39 }
 0x2e4   :  { %1838 = vpow2.f32 %v1693_v40 }
 0x2e5   :  { %1840 = vpow2.f32 %v1707_v41 }
 0x2e6   :  { %1842 = vpow2.f32 %v1709_v42 }
 0x2ed   :  { %v1837_v43 = vpop.eup %1836 }
 0x2ee   :  { %v1839_v46 = vpop.eup %1838  ;;  %v1695_v47 = vadd.f32 1.0, %v1837_v43 }
 0x2ef   :  { %v1841_v48 = vpop.eup %1840  ;;  %v1696_v22 = vadd.f32 1.0, %v1839_v46 }
 0x2f0   :  { %v1843_v49 = vpop.eup %1842  ;;  %1844 = vrcp.f32 %v1695_v47  ;;  %v1711_v21 = vadd.f32 1.0, %v1841_v48 }
 0x2f1   :  { %1846 = vrcp.f32 %v1696_v22  ;;  %v1712_v50 = vadd.f32 1.0, %v1843_v49 }
 0x2f2   :  { %1848 = vrcp.f32 %v1711_v21 }
 0x2f3   :  { %1850 = vrcp.f32 %v1712_v50 }
 0x2fa   :  { %v1845_v51 = vpop.eup %1844 }
 0x2fb   :  { %v1847_v52 = vpop.eup %1846  ;;  %1701 = vst [vmem:[%s2239_s2] sm:$0xff] %v1845_v51 }
 0x2fc   :  { %v1849_v53 = vpop.eup %1848  ;;  %1702 = vst [vmem:[%s2239_s2 + $0x8] sm:$0xff] %v1847_v52 }
 0x2fd   :  { %v1851_v54 = vpop.eup %1850  ;;  %1787 = vst [vmem:[%s2239_s2 + $0x10] sm:$0xff] %v1849_v53 }
 0x2fe   :  { %1788 = vst [vmem:[%s2239_s2 + $0x18] sm:$0xff] %v1851_v54 }

</bundles_post_ra>
